<compile_context>
chip_gen: v7x
topology: tpu7x:2x2x1
jax: 0.10.0
libtpu: 0.0.40
codegen_flags: <defaults>
</compile_context>

<pallas_src>
import jax
import jax.numpy as jnp
from jax.experimental import pallas as pl
from jax.experimental.pallas import tpu as pltpu

SMOOTH = 1e-6
GAMMA = 2.0
ALPHA = 0.7

SUBLANES = 8
LANES = 128
MAX_BLOCK_ROWS = 2048   # 2048 * 128 * 4B = 1 MiB per input per pipeline buffer
NUM_CORES = 2           # "parallel" grid axis for v7x megacore; no-op on 1-TC chips


def _round_up(x: int, m: int) -> int:
    return ((x + m - 1) // m) * m


def _ftl_kernel(t_ref, p_ref, acc_ref):
    """acc_ref: (3*SUBLANES, LANES) per-core accumulator living in the output.

    rows [0:8)   -> per-lane partials of sum(t * p)
    rows [8:16)  -> per-lane partials of sum(t)
    rows [16:24) -> per-lane partials of sum(p)
    """
    j = pl.program_id(1)

    @pl.when(j == 0)
    def _():
        acc_ref[...] = jnp.zeros_like(acc_ref)

    t = t_ref[...].astype(jnp.float32)
    p = p_ref[...].astype(jnp.float32)

    # Fold the (block_rows, 128) tile into (groups, 8, 128) and reduce over the
    # leading axis: pure VPU adds across vregs, no cross-lane/XLU work.
    tp = (t * p).reshape(-1, SUBLANES, LANES)
    ts = t.reshape(-1, SUBLANES, LANES)
    ps = p.reshape(-1, SUBLANES, LANES)

    acc_ref[0:SUBLANES, :] += jnp.sum(tp, axis=0)
    acc_ref[SUBLANES:2 * SUBLANES, :] += jnp.sum(ts, axis=0)
    acc_ref[2 * SUBLANES:3 * SUBLANES, :] += jnp.sum(ps, axis=0)


def focal_tversky_loss(y_true: jax.Array, y_pred: jax.Array,
                       smooth: float = SMOOTH,
                       gamma: float = GAMMA,
                       alpha: float = ALPHA) -> jax.Array:
    """Scalar float32 loss, matching the PyTorch FocalTverskyLoss.forward."""
    assert y_true.shape == y_pred.shape

    # Stream in native dtype; the kernel upcasts per-tile.
    t_flat = jnp.ravel(y_true)
    p_flat = jnp.ravel(y_pred)
    n = t_flat.shape[0]

    # Lane-dense layout: rows of 128, rounded to a multiple of 8 sublanes.
    rows = _round_up(pl.cdiv(n, LANES), SUBLANES)
    block_rows = min(MAX_BLOCK_ROWS, rows)
    # Equal number of blocks per core (zeros in the padded tail are harmless).
    total_rows = _round_up(rows, NUM_CORES * block_rows)

    pad = total_rows * LANES - n
    if pad:
        t_flat = jnp.pad(t_flat, (0, pad))
        p_flat = jnp.pad(p_flat, (0, pad))

    t2d = t_flat.reshape(total_rows, LANES)
    p2d = p_flat.reshape(total_rows, LANES)

    nblocks = total_rows // block_rows
    blocks_per_core = nblocks // NUM_CORES

    def in_map(c, j):
        return (c * blocks_per_core + j, 0)

    partials = pl.pallas_call(
        _ftl_kernel,
        out_shape=jax.ShapeDtypeStruct(
            (NUM_CORES * 3 * SUBLANES, LANES), jnp.float32),
        grid_spec=pltpu.PrefetchScalarGridSpec(
            num_scalar_prefetch=0,
            grid=(NUM_CORES, blocks_per_core),
            in_specs=[
                pl.BlockSpec((block_rows, LANES), in_map),
                pl.BlockSpec((block_rows, LANES), in_map),
            ],
            out_specs=pl.BlockSpec((3 * SUBLANES, LANES), lambda c, j: (c, 0)),
        ),
        compiler_params=pltpu.CompilerParams(
            dimension_semantics=("parallel", "arbitrary"),
        ),
    )(t2d, p2d)

    # Tiny epilogue: combine per-core, per-lane partials and apply the formula.
    sums = jnp.sum(
        partials.reshape(NUM_CORES, 3, SUBLANES, LANES), axis=(0, 2, 3))
    tp = sums[0]
    st = sums[1]
    sp = sums[2]
    fn = st - tp
    fp = sp - tp
    tversky = (tp + smooth) / (tp + alpha * fn + (1.0 - alpha) * fp + smooth)
    one_minus = 1.0 - tversky
    if gamma == 2 or gamma == 2.0:
        return one_minus * one_minus  # exact square, avoids exp/log pow path
    return one_minus ** gamma


def _reference(y_true, y_pred):
    t = jnp.ravel(y_true).astype(jnp.float32)
    p = jnp.ravel(y_pred).astype(jnp.float32)
    tp = jnp.sum(t * p)
    fn = jnp.sum(t * (1.0 - p))
    fp = jnp.sum((1.0 - t) * p)
    ti = (tp + SMOOTH) / (tp + ALPHA * fn + (1.0 - ALPHA) * fp + SMOOTH)
    return (1.0 - ti) ** GAMMA


if __name__ == "__main__":
    key = jax.random.PRNGKey(0)
    k1, k2 = jax.random.split(key)

    # Synthetic segmentation-style inputs, NCHW: batch=2, channels=4, 16x16.
    shape = (2, 4, 16, 16)
    y_true = (jax.random.uniform(k1, shape) > 0.5).astype(jnp.float32)
    y_pred = jax.random.uniform(k2, shape, dtype=jnp.float32)

    loss_fn = jax.jit(focal_tversky_loss)
    loss = jax.block_until_ready(loss_fn(y_true, y_pred))

    ref = _reference(y_true, y_pred)
    assert jnp.allclose(loss, ref, rtol=1e-4, atol=1e-6), (loss, ref)

    print("KERNEL_OK")
</pallas_src>

<mosaic_0001>
module attributes {stable_mosaic.version = 11 : i64} {
  func.func @_ftl_kernel(%arg0: i32, %arg1: i32, %arg2: memref<16x128xf32, #tpu.memory_space<vmem>>, %arg3: memref<16x128xf32, #tpu.memory_space<vmem>>, %arg4: memref<24x128xf32, #tpu.memory_space<vmem>>) attributes {dimension_semantics = [#tpu.dimension_semantics<parallel>, #tpu.dimension_semantics<arbitrary>], iteration_bounds = array<i64: 2, 1>, scalar_prefetch = 0 : i64, scratch_operands = 0 : i64, tpu.core_type = #tpu.core_type<tc>, window_params = [{transform_indices = @transform_0, window_bounds = array<i64: 16, 128>}, {transform_indices = @transform_1, window_bounds = array<i64: 16, 128>}, {transform_indices = @transform_2, window_bounds = array<i64: 24, 128>}]} {
    %c0_i32 = arith.constant 0 : i32
    %0 = arith.cmpi eq, %arg1, %c0_i32 : i32
    %1 = arith.extui %0 : i1 to i32
    %c0_i32_0 = arith.constant 0 : i32
    %2 = arith.cmpi ne, %1, %c0_i32_0 : i32
    scf.if %2 {
      %cst_16 = arith.constant 0.000000e+00 : f32
      %21 = vector.broadcast %cst_16 : f32 to vector<24x128xf32>
      %c0_17 = arith.constant 0 : index
      %c0_18 = arith.constant 0 : index
      %22 = vector.load %arg4[%c0_17, %c0_18] : memref<24x128xf32, #tpu.memory_space<vmem>>, vector<24x128xf32>
      tpu.vector_store %arg4[%c0_17, %c0_18], %21 {strides = array<i32>} : memref<24x128xf32, #tpu.memory_space<vmem>>, vector<24x128xf32>,
    } else {
    }
    %c0 = arith.constant 0 : index
    %c0_1 = arith.constant 0 : index
    %3 = vector.load %arg2[%c0, %c0_1] : memref<16x128xf32, #tpu.memory_space<vmem>>, vector<16x128xf32>
    %c0_2 = arith.constant 0 : index
    %c0_3 = arith.constant 0 : index
    %4 = vector.load %arg3[%c0_2, %c0_3] : memref<16x128xf32, #tpu.memory_space<vmem>>, vector<16x128xf32>
    %5 = arith.mulf %3, %4 : vector<16x128xf32>
    %6 = vector.shape_cast %5 : vector<16x128xf32> to vector<2x8x128xf32>
    %7 = vector.shape_cast %3 : vector<16x128xf32> to vector<2x8x128xf32>
    %8 = vector.shape_cast %4 : vector<16x128xf32> to vector<2x8x128xf32>
    %c0_4 = arith.constant 0 : index
    %c0_5 = arith.constant 0 : index
    %9 = vector.load %arg4[%c0_4, %c0_5] : memref<24x128xf32, #tpu.memory_space<vmem>>, vector<8x128xf32>
    %cst = arith.constant dense<0.000000e+00> : vector<8x128xf32>
    %10 = vector.multi_reduction <add>, %6, %cst [0] : vector<2x8x128xf32> to vector<8x128xf32>
    %11 = arith.addf %9, %10 : vector<8x128xf32>
    %c0_6 = arith.constant 0 : index
    %c0_7 = arith.constant 0 : index
    %12 = vector.load %arg4[%c0_6, %c0_7] : memref<24x128xf32, #tpu.memory_space<vmem>>, vector<8x128xf32>
    tpu.vector_store %arg4[%c0_6, %c0_7], %11 {strides = array<i32>} : memref<24x128xf32, #tpu.memory_space<vmem>>, vector<8x128xf32>,
    %c8 = arith.constant 8 : index
    %c0_8 = arith.constant 0 : index
    %13 = vector.load %arg4[%c8, %c0_8] : memref<24x128xf32, #tpu.memory_space<vmem>>, vector<8x128xf32>
    %cst_9 = arith.constant dense<0.000000e+00> : vector<8x128xf32>
    %14 = vector.multi_reduction <add>, %7, %cst_9 [0] : vector<2x8x128xf32> to vector<8x128xf32>
    %15 = arith.addf %13, %14 : vector<8x128xf32>
    %c8_10 = arith.constant 8 : index
    %c0_11 = arith.constant 0 : index
    %16 = vector.load %arg4[%c8_10, %c0_11] : memref<24x128xf32, #tpu.memory_space<vmem>>, vector<8x128xf32>
    tpu.vector_store %arg4[%c8_10, %c0_11], %15 {strides = array<i32>} : memref<24x128xf32, #tpu.memory_space<vmem>>, vector<8x128xf32>,
    %c16 = arith.constant 16 : index
    %c0_12 = arith.constant 0 : index
    %17 = vector.load %arg4[%c16, %c0_12] : memref<24x128xf32, #tpu.memory_space<vmem>>, vector<8x128xf32>
    %cst_13 = arith.constant dense<0.000000e+00> : vector<8x128xf32>
    %18 = vector.multi_reduction <add>, %8, %cst_13 [0] : vector<2x8x128xf32> to vector<8x128xf32>
    %19 = arith.addf %17, %18 : vector<8x128xf32>
    %c16_14 = arith.constant 16 : index
    %c0_15 = arith.constant 0 : index
    %20 = vector.load %arg4[%c16_14, %c0_15] : memref<24x128xf32, #tpu.memory_space<vmem>>, vector<8x128xf32>
    tpu.vector_store %arg4[%c16_14, %c0_15], %19 {strides = array<i32>} : memref<24x128xf32, #tpu.memory_space<vmem>>, vector<8x128xf32>,
    return
  }
  func.func @transform_0(%arg0: i32, %arg1: i32) -> (i32, i32) {
    %c1_i32 = arith.constant 1 : i32
    %0 = arith.muli %arg0, %c1_i32 : i32
    %1 = arith.addi %0, %arg1 : i32
    %c0_i32 = arith.constant 0 : i32
    %c0_i32_0 = arith.constant 0 : i32
    return %1, %c0_i32 : i32, i32
  }
  func.func @transform_1(%arg0: i32, %arg1: i32) -> (i32, i32) {
    %c1_i32 = arith.constant 1 : i32
    %0 = arith.muli %arg0, %c1_i32 : i32
    %1 = arith.addi %0, %arg1 : i32
    %c0_i32 = arith.constant 0 : i32
    %c0_i32_0 = arith.constant 0 : i32
    return %1, %c0_i32 : i32, i32
  }
  func.func @transform_2(%arg0: i32, %arg1: i32) -> (i32, i32) {
    %c0_i32 = arith.constant 0 : i32
    %c0_i32_0 = arith.constant 0 : i32
    return %arg0, %c0_i32 : i32, i32
  }
}

</mosaic_0001>

<bundles_post_ra>
// kernel: focal_tversky_loss.1
= control target key start
LH: loop header
LB: loop body
LE: loop exit
PB: predicated region body
PF: predicated region fallthrough
CT: control target
= control target key end

     0   :  { %s374_s9 = smov 0   ;;  %s376_s10 = smov 0   ;;  %s410_s0 = inlined_call_operand.vmem [shape: f32[32,128], index: 0, kind: input, shape index: {}]   ;;  %s411_s1 = inlined_call_operand.vmem [shape: f32[32,128], index: 1, kind: input, shape index: {}]   ;;  %s412_s2 = inlined_call_operand.vmem [shape: f32[48,128], index: 2, kind: output, shape index: {}]  }
   0x1   :  { %s378_s11 = smov 0  }
   0x2 LB: > { %s24_s12 = sadd.s32 1, %s352_s10  ;;  %p301_p0 = scmp.ge.s32.totalorder %s356_s11, 1  ;;  %s356_s11 = sphi %s378_s11, %s12_s11   ;;  %s352_s10 = sphi %s376_s10, %s414_s10   ;;  %s348_s9 = sphi %s374_s9, %s413_s9  }
   0x3   : > { %p26_p1 = scmp.ge.s32.totalorder %s24_s12, 2  ;;  %p144_p2 = scmp.lt.s32.totalorder %s356_s11, 3 }
   0x5   : > { %s416_s12 = smov (%p26_p1, %s24_s12), 0  ;;  %p145_p3 = pnand %p301_p0, %p144_p2 }
   0x6   : > { %s189_s13 = smul.u32 (!%p145_p3), 3, %s348_s9  ;;  %s302_s14 = sshll.u32 (!%p145_p3), %s348_s9, 1  ;;  %v358_v2 = vmov (!%p145_p3), 0.0  }
   0x7   : > { %148 = sbr.rel (%p145_p3) target bundleno = 29 (0x1d), region = 28  ;;  %p175_p4 = scmp.lt.s32.totalorder (!%p145_p3), %s302_s14, 3 }
   0x8   : > { %p190_p5 = scmp.lt.s32.totalorder (!%p145_p3), %s189_s13, 5 }
   0xe   : > { %s418_s14 = smov (!%p175_p4, %s302_s14), 3  ;;  %s420_s13 = smov (!%p190_p5, %s189_s13), 5 }
   0xf   : > { %s303_s15 = sshll.u32 %s418_s14, 3  ;;  %s306_s16 = sshll.u32 %s420_s13, 3 }
  0x10   : > { %s178_s19 = scalar_lea.vmem %s410_s0, %s303_s15  ;;  %s193_s22 = scalar_lea.vmem %s412_s2, %s306_s16 }
  0x11   : > { %s186_s25 = scalar_lea.vmem %s411_s1, %s303_s15  ;;  %v202_v0 = vld [vmem:[%s178_s19] sm:$0xff]  ;;  %v203_v1 = vld [vmem:[%s178_s19 + $0x8] sm:$0xff]  ;;  %199 = vst [vmem:[%s193_s22] sm:$0xff] %v358_v2  ;;  %200 = vst [vmem:[%s193_s22 + $0x8] sm:$0xff] %v358_v2 }
  0x12   : > { %v204_v3 = vld [vmem:[%s186_s25] sm:$0xff]  ;;  %v205_v4 = vld [vmem:[%s186_s25 + $0x8] sm:$0xff]  ;;  %201 = vst [vmem:[%s193_s22 + $0x10] sm:$0xff] %v358_v2  ;;  %v213_v10 = vadd.f32 %v203_v1, %v202_v0 }
  0x13   : > { %v206_v5 = vmul.f32 %v204_v3, %v202_v0  ;;  %v207_v6 = vmul.f32 %v205_v4, %v203_v1  ;;  %v217_v13 = vadd.f32 %v205_v4, %v204_v3 }
  0x15   : > { %v209_v7 = vadd.f32 %v207_v6, %v206_v5 }
  0x18   : > { %v208_v8 = vld [vmem:[%s193_s22] sm:$0xff]  ;;  %v212_v11 = vld [vmem:[%s193_s22 + $0x8] sm:$0xff] }
  0x19   : > { %v210_v9 = vadd.f32 %v209_v7, %v208_v8  ;;  %v214_v12 = vadd.f32 %v213_v10, %v212_v11  ;;  %v216_v14 = vld [vmem:[%s193_s22 + $0x10] sm:$0xff] }
  0x1a   : > { %v218_v15 = vadd.f32 %v217_v13, %v216_v14 }
  0x1b   : > { %211 = vst [vmem:[%s193_s22] sm:$0xff] %v210_v9  ;;  %215 = vst [vmem:[%s193_s22 + $0x8] sm:$0xff] %v214_v12 }
  0x1c   : > { %219 = vst [vmem:[%s193_s22 + $0x10] sm:$0xff] %v218_v15 }
  0x1d PF: > { %s12_s11 = sadd.s32 1, %s356_s11   ;;  %s413_s9 = smov %s352_s10 }
  0x1e   : > { %p9_p6 = scmp.ge.s32.totalorder %s12_s11, 4   ;;  %s414_s10 = smov %s416_s12 }
  0x20   :  { %11 = sbr.rel (!%p9_p6) target bundleno = 2 (0x2), region = 65 }

</bundles_post_ra>
